<compile_context>
chip_gen: v7x
topology: tpu7x:2x2x1
jax: 0.10.0
libtpu: 0.0.40
codegen_flags: <defaults>
</compile_context>

<pallas_src>
import functools

import jax
import jax.numpy as jnp
from jax.experimental import pallas as pl
from jax.experimental.pallas import tpu as pltpu

_LANES = 512          # last block dim: lane-dense multiple of 128
_MAX_TILE_ROWS = 256  # 256 * 512 * 4B = 512 KiB per f32 tile


def _round_up(n, m):
    return ((n + m - 1) // m) * m


def _dyrelu_a_kernel(coefs_ref, x_ref, o_ref, *, k):
    """coefs_ref: SMEM [B, 2k] f32; x_ref/o_ref: VMEM (1, tile_r, LANES)."""
    b = pl.program_id(0)
    x = x_ref[0]                                            # [tile_r, LANES] f32
    # max over k affine branches; coefficients come from SMEM as scalars and splat
    # onto the vector tile, so the loop is pure VALU fill on a streaming kernel.
    res = x * coefs_ref[b, 0] + coefs_ref[b, k]
    for j in range(1, k):
        res = jnp.maximum(res, x * coefs_ref[b, j] + coefs_ref[b, k + j])
    o_ref[0] = res.astype(o_ref.dtype)


def lang_dyrelu_a(x, q, params, *, k=2):
    """x: [B, C, H, W] float32 (NCHW), q: [B, q_dim] float32."""
    w1, b1, w2, b2, lam, initv = params
    B, C, H, W = x.shape
    n = C * H * W

    # ---- coefficient branch (hoisted out of the kernel: tiny matmuls, plain JAX) ----
    theta = jnp.maximum(q @ w1 + b1, 0.0) @ w2 + b2          # [B, 2k]
    theta = 2.0 * jax.nn.sigmoid(theta) - 1.0
    coefs = theta * lam + initv                              # [B, 2k]

    # ---- lane-dense tiling of the activation ----
    n_pad = _round_up(n, _LANES)
    rows = n_pad // _LANES
    if rows <= _MAX_TILE_ROWS:
        tile_r, rows_pad = rows, rows        # single row-tile (full-dim block is legal)
    else:
        tile_r = _MAX_TILE_ROWS
        rows_pad = _round_up(rows, _MAX_TILE_ROWS)
    total = rows_pad * _LANES

    x_flat = x.reshape(B, n)
    if total != n:
        x_flat = jnp.pad(x_flat, ((0, 0), (0, total - n)))
    x3 = x_flat.reshape(B, rows_pad, _LANES)

    kernel = functools.partial(_dyrelu_a_kernel, k=k)
    out = pl.pallas_call(
        kernel,
        out_shape=jax.ShapeDtypeStruct((B, rows_pad, _LANES), x.dtype),
        grid=(B, rows_pad // tile_r),
        in_specs=[
            pl.BlockSpec(memory_space=pltpu.MemorySpace.SMEM),          # coefs [B, 2k]
            pl.BlockSpec((1, tile_r, _LANES), lambda b, r: (b, r, 0)),  # x row-tile
        ],
        out_specs=pl.BlockSpec((1, tile_r, _LANES), lambda b, r: (b, r, 0)),
        compiler_params=pltpu.CompilerParams(
            dimension_semantics=("parallel", "parallel")),
    )(coefs, x3)

    out = out.reshape(B, total)[:, :n]
    return out.reshape(B, C, H, W)


def lang_dyrelu_a_reference(x, q, params, *, k=2):
    """Pure-JAX reference mirroring the PyTorch forward exactly."""
    w1, b1, w2, b2, lam, initv = params
    theta = jnp.maximum(q @ w1 + b1, 0.0) @ w2 + b2
    theta = 2.0 * jax.nn.sigmoid(theta) - 1.0
    coefs = theta * lam + initv                       # [B, 2k]
    a = coefs[:, :k][:, None, None, None, :]          # [B,1,1,1,k]
    bcoef = coefs[:, k:][:, None, None, None, :]
    out = x[..., None] * a + bcoef                    # [B,C,H,W,k]
    return jnp.max(out, axis=-1)


def make_params(key, q_dim, channels, reduction=4, k=2):
    """Deterministic synthetic parameters (shapes match nn.Linear in the module)."""
    hidden = channels // reduction
    k1, k2, k3, k4 = jax.random.split(key, 4)
    w1 = jax.random.normal(k1, (q_dim, hidden), jnp.float32) * 0.1      # fc1.weight.T
    b1 = jax.random.normal(k2, (1, hidden), jnp.float32) * 0.1          # fc1.bias
    w2 = jax.random.normal(k3, (hidden, 2 * k), jnp.float32) * 0.1      # fc2.weight.T
    b2 = jax.random.normal(k4, (1, 2 * k), jnp.float32) * 0.1           # fc2.bias
    lam = jnp.array([1.0] * k + [0.5] * k, jnp.float32).reshape(1, 2 * k)
    initv = jnp.array([1.0] + [0.0] * (2 * k - 1), jnp.float32).reshape(1, 2 * k)
    return (w1, b1, w2, b2, lam, initv)


if __name__ == "__main__":
    # Small shapes consistent with the module: conv_type='2d' -> x is NCHW.
    B, C, H, W = 2, 8, 8, 16      # channels = 8
    q_dim, reduction, k = 32, 4, 2

    key = jax.random.PRNGKey(0)
    kx, kq, kp = jax.random.split(key, 3)
    x = jax.random.normal(kx, (B, C, H, W), jnp.float32)
    q = jax.random.normal(kq, (B, q_dim), jnp.float32)
    params = make_params(kp, q_dim, C, reduction, k)

    out = jax.block_until_ready(lang_dyrelu_a(x, q, params, k=k))
    ref = lang_dyrelu_a_reference(x, q, params, k=k)

    assert out.shape == (B, C, H, W)
    assert jnp.allclose(out, ref, atol=1e-5, rtol=1e-5), "mismatch vs reference"

    print("KERNEL_OK")
</pallas_src>

<mosaic_0001>
module attributes {stable_mosaic.version = 11 : i64} {
  func.func @_dyrelu_a_kernel(%arg0: i32, %arg1: i32, %arg2: memref<2x4xf32, #tpu.memory_space<smem>>, %arg3: memref<1x2x512xf32, #tpu.memory_space<vmem>>, %arg4: memref<1x2x512xf32, #tpu.memory_space<vmem>>) attributes {dimension_semantics = [#tpu.dimension_semantics<parallel>, #tpu.dimension_semantics<parallel>], iteration_bounds = array<i64: 2, 1>, scalar_prefetch = 0 : i64, scratch_operands = 0 : i64, tpu.core_type = #tpu.core_type<tc>, window_params = [{transform_indices = @transform_0, window_bounds = array<i64: 2, 4>}, {transform_indices = @transform_1, window_bounds = array<i64: 1, 2, 512>}, {transform_indices = @transform_2, window_bounds = array<i64: 1, 2, 512>}]} {
    %c0 = arith.constant 0 : index
    %c0_0 = arith.constant 0 : index
    %c0_1 = arith.constant 0 : index
    %0 = vector.load %arg3[%c0, %c0_0, %c0_1] : memref<1x2x512xf32, #tpu.memory_space<vmem>>, vector<1x2x512xf32>
    %1 = vector.shape_cast %0 : vector<1x2x512xf32> to vector<2x512xf32>
    %2 = arith.index_cast %arg0 : i32 to index
    %c0_2 = arith.constant 0 : index
    %3 = memref.load %arg2[%2, %c0_2] : memref<2x4xf32, #tpu.memory_space<smem>>
    %4 = vector.broadcast %3 : f32 to vector<2x512xf32>
    %5 = arith.mulf %1, %4 : vector<2x512xf32>
    %6 = arith.index_cast %arg0 : i32 to index
    %c2 = arith.constant 2 : index
    %7 = memref.load %arg2[%6, %c2] : memref<2x4xf32, #tpu.memory_space<smem>>
    %8 = vector.broadcast %7 : f32 to vector<2x512xf32>
    %9 = arith.addf %5, %8 : vector<2x512xf32>
    %10 = arith.index_cast %arg0 : i32 to index
    %c1 = arith.constant 1 : index
    %11 = memref.load %arg2[%10, %c1] : memref<2x4xf32, #tpu.memory_space<smem>>
    %12 = vector.broadcast %11 : f32 to vector<2x512xf32>
    %13 = arith.mulf %1, %12 : vector<2x512xf32>
    %14 = arith.index_cast %arg0 : i32 to index
    %c3 = arith.constant 3 : index
    %15 = memref.load %arg2[%14, %c3] : memref<2x4xf32, #tpu.memory_space<smem>>
    %16 = vector.broadcast %15 : f32 to vector<2x512xf32>
    %17 = arith.addf %13, %16 : vector<2x512xf32>
    %18 = arith.maximumf %9, %17 : vector<2x512xf32>
    %c0_3 = arith.constant 0 : index
    %c0_4 = arith.constant 0 : index
    %c0_5 = arith.constant 0 : index
    %19 = vector.load %arg4[%c0_3, %c0_4, %c0_5] : memref<1x2x512xf32, #tpu.memory_space<vmem>>, vector<1x2x512xf32>
    %20 = vector.shape_cast %19 : vector<1x2x512xf32> to vector<2x512xf32>
    %21 = vector.shape_cast %18 : vector<2x512xf32> to vector<1x2x512xf32>
    tpu.vector_store %arg4[%c0_3, %c0_4, %c0_5], %21 {strides = array<i32>} : memref<1x2x512xf32, #tpu.memory_space<vmem>>, vector<1x2x512xf32>,
    return
  }
  func.func @transform_0(%arg0: i32, %arg1: i32) -> (i32, i32) {
    %c0_i32 = arith.constant 0 : i32
    %c0_i32_0 = arith.constant 0 : i32
    %c0_i32_1 = arith.constant 0 : i32
    return %c0_i32, %c0_i32_0 : i32, i32
  }
  func.func @transform_1(%arg0: i32, %arg1: i32) -> (i32, i32, i32) {
    %c0_i32 = arith.constant 0 : i32
    %c0_i32_0 = arith.constant 0 : i32
    return %arg0, %arg1, %c0_i32 : i32, i32, i32
  }
  func.func @transform_2(%arg0: i32, %arg1: i32) -> (i32, i32, i32) {
    %c0_i32 = arith.constant 0 : i32
    %c0_i32_0 = arith.constant 0 : i32
    return %arg0, %arg1, %c0_i32 : i32, i32, i32
  }
}

</mosaic_0001>

<bundles_post_ra>
// kernel: tpu_custom_call.1
= control target key start
LH: loop header
LB: loop body
LE: loop exit
PB: predicated region body
PF: predicated region fallthrough
CT: control target
= control target key end

     0   :  { %7 = vsyncpa [#allocation5], 0  ;;  %s790_s0 = inlined_call_operand.hbm [shape: f32[2,4], index: 0, kind: input, shape index: {}]   ;;  %s791_s1 = inlined_call_operand.hbm [shape: f32[2,2,512], index: 1, kind: input, shape index: {}]   ;;  %s792_s2 = inlined_call_operand.hbm [shape: f32[2,2,512], index: 2, kind: output, shape index: {}]  }
   0x1   :  { %8 = vsyncpa [#allocation3], 0 }
   0x2   :  { %10 = vsyncpa [#allocation3 + $0x1], 0 }
   0x3   :  { %11 = vsyncpa [#allocation4], 0 }
   0x4   :  { %13 = vsyncpa [#allocation4 + $0x1], 0  ;;  %s564_s9 = smov 0   ;;  %s566_s10 = smov 0  }
   0x5   :  { %s568_s11 = smov 0   ;;  %s570_s12 = smov 0  }
   0x6   :  { %s572_s13 = smov 0   ;;  %s574_s14 = smov 0  }
   0x7 LB: > { %s322_s15 = sadd.s32 4294967295, %s544_s14   ;;  %s323_s16 = sadd.s32 4294967294, %s544_s14   ;;  %s544_s14 = sphi %s574_s14, %s19_s14   ;;  %s540_s13 = sphi %s572_s13, %s816_s13   ;;  %s536_s12 = sphi %s570_s12, %s815_s12   ;;  %s532_s11 = sphi %s568_s11, %s814_s11   ;;  %s528_s10 = sphi %s566_s10, %s813_s10   ;;  %s524_s9 = sphi %s564_s9, %s812_s9  }
   0x8   : > { %p74_p0 = scmp.ne.s32.totalorder %s528_s10, %s524_s9  ;;  %p598_p1 = scmp.eq.s32.totalorder %s322_s15, 0 }
   0x9   : > { %p602_p2 = scmp.eq.s32.totalorder %s322_s15, 1  ;;  %p106_p3 = scmp.eq.s32.totalorder %s323_s16, 1 }
   0xa   : > { %s797_s17 = scalar_select %p598_p1, 1, 0 }
   0xb   : > { %p608_p4 = por %p598_p1, %p74_p0  ;;  %p324_p5 = scmp.ge.s32.totalorder %s544_s14, 1 }
   0xc   : > { %p613_p6 = por %p106_p3, %p74_p0  ;;  %p113_p7 = scmp.lt.s32.totalorder %s544_s14, 3 }
   0xd   : > { %s799_s19 = scalar_select %p608_p4, 1, 0 }
   0xe   : > { %s800_s20 = scalar_select %p613_p6, 1, 0 }
   0xf   : > { %p618_p8 = pnand %p324_p5, %p113_p7  ;;  %s31_s22 = sadd.s32 1, %s540_s13 }
  0x10   : > { %p632_p12 = scmp.ge.s32.totalorder %s31_s22, 2  ;;  %s61_s25 = sadd.s32 1, %s532_s11 }
  0x11   : > { %p350_p10 = pneg %p618_p8  ;;  %p68_p13 = scmp.ne.s32.totalorder %s532_s11, %s528_s10 }
  0x12   : > { %p69_p0 = scmp.eq.s32.totalorder %s544_s14, 0  ;;  %s415_s28 = scalar_lea.hbm %s790_s0, 32 }
  0x13   : > { %p628_p11 = pnand %p350_p10, %p598_p1  ;;  %p416_p3 = scmp.ne.s32.totalorder %s790_s0, %s415_s28 }
  0x14   : > { %p422_p9 = scmp.lt.u32.totalorder %s415_s28, %s790_s0 }
  0x15   : > { %p417_p5 = pneg %p628_p11 }
  0x17   : > { %p418_p7 = pnand %p417_p5, %p416_p3 }
  0x19   : > { %p419_p10 = pneg %p418_p7 }
  0x1b   : > { %p424_p6 = pnand %p422_p9, %p419_p10 }
  0x1d   : > { %427 = shalt.err (!%p424_p6)
}
  0x1e   : > { %s546_s5 = smov [#allocation2]   ;;  %s818_s22 = smov (%p632_p12, %s31_s22), 0 }
  0x1f   : > { %353 = dma.hbm_to_smem (!%p628_p11), %s790_s0, 32, %s546_s5, [#allocation5]  }
  0x20   : > { %p663_p6 = por %p69_p0, %p68_p13  ;;  %p672_p9 = por %p602_p2, %p68_p13 }
  0x21   : > { %s56_s16 = ssub.s32 %s540_s13, %s818_s22  ;;  %p363_p3 = scmp.lt.s32.totalorder %s544_s14, 2 }
  0x22   : > { %s805_s15 = scalar_select %p672_p9, 1, 0 }
  0x23   : > { %p59_p5 = scmp.eq.s32.totalorder %s56_s16, 0  ;;  %s135_s23 = sand.u32 1, %s532_s11  }
  0x24   : > { %s327_s24 = sshll.u32 %s135_s23, 3  ;;  %s340_s27 = sshll.u32 %s540_s13, 7 }
  0x25   : > { %s681_s26 = scalar_select %p59_p5, %s532_s11, %s61_s25  }
  0x26   : > { %s687_s30 = scalar_lea.hbm %s791_s1, %s340_s27  ;;  %s139_s18 = scalar_lea.vmem [#allocation6], %s327_s24 }
  0x27   : > { %s149_s3 = sshll.u32 %s139_s18, 4  ;;  %p693_p2 = pnand %p363_p3, %p663_p6  ;;  %s689_s3 = int_to_ptr.vmem [resolvable:$true] %s149_s3 }
  0x28   : > { %s136_s25 = scalar_lea.sflag [#allocation3], %s135_s23  ;;  %s428_s5 = scalar_lea.hbm %s687_s30, 128 }
  0x29   : > { %p429_p11 = scmp.ne.s32.totalorder %s687_s30, %s428_s5  ;;  %p430_p12 = pneg %p693_p2 }
  0x2a   : > { %s433_s16 = scalar_lea.hbm %s791_s1, 256  ;;  %p434_p7 = scmp.lt.u32.totalorder %s687_s30, %s791_s1 }
  0x2b   : > { %p431_p13 = pnand %p430_p12, %p429_p11  ;;  %p435_p10 = scmp.lt.u32.totalorder %s433_s16, %s428_s5 }
  0x2c   : > { %p437_p3 = scmp.lt.u32.totalorder %s428_s5, %s687_s30 }
  0x2d   : > { %p432_p0 = pneg %p431_p13  ;;  %p436_p6 = por %p435_p10, %p434_p7 }
  0x2f   : > { %p438_p5 = por %p437_p3, %p436_p6 }
  0x31   : > { %p439_p9 = pnand %p438_p5, %p432_p0 }
  0x33   : > { %442 = shalt.err (!%p439_p9)
}
  0x34   : > { %s443_s23 = scalar_lea.vmem %s689_s3, 128  ;;  %s547_s27 = smov [#allocation6]  }
  0x35   : > { %p444_p11 = scmp.ne.s32.totalorder %s689_s3, %s443_s23  ;;  %s448_s28 = sshll.u32 %s547_s27, 4  ;;  %s449_s28 = int_to_ptr.vmem [resolvable:$false] %s448_s28 }
  0x36   : > { %s450_s29 = scalar_lea.vmem %s449_s28, 256  ;;  %p451_p1 = scmp.lt.s32.totalorder %s689_s3, %s449_s28 }
  0x37   : > { %p446_p13 = pnand %p444_p11, %p430_p12  ;;  %p452_p7 = scmp.lt.s32.totalorder %s450_s29, %s443_s23 }
  0x39   : > { %p447_p4 = pneg %p446_p13  ;;  %p453_p10 = por %p452_p7, %p451_p1 }
  0x3b   : > { %p454_p6 = pnand %p453_p10, %p447_p4 }
  0x3d   : > { %457 = shalt.err (!%p454_p6)
}
  0x3e   : > { %357 = dma.hbm_to_vmem [thread:$0]  (!%p693_p2), %s687_s30, 128, %s689_s3, %s136_s25  }
  0x3f   : > { %158 = sbr.rel (%p618_p8) target bundleno = 107 (0x6b), region = 28  ;;  %p807_p9 = scmp.ne.s32.totalorder (!%p618_p8), %s797_s17, 0 }
  0x46   : > { %511 = dma.done.wait (%p807_p9), [#allocation5], 32  }
  0x47   : > { %513 = vsyncadd (%p807_p9), [#allocation5], 4294967264  ;;  %s729_s18 = sand.u32 1, %s528_s10   ;;  %p808_p1 = scmp.ne.s32.totalorder %s799_s19, 0 }
  0x48   : > { %s332_s5 = sshll.u32 %s729_s18, 3  ;;  %s165_s4 = scalar_lea.sflag [#allocation3], %s729_s18 }
  0x49   : > { %s168_s6 = scalar_lea.vmem [#allocation6], %s332_s5 }
  0x4a   : > { %515 = dma.done.wait (%p808_p1), %s165_s4, 128  }
  0x4b   : > { %517 = vsyncadd (%p808_p1), %s165_s4, 4294967168 }
  0x4c   : > { %173 = sfence }
  0x4d   : > { %s334_s21 = sshll.u32 %s536_s12, 7  ;;  %v190_v0 = vld [vmem:[%s168_s6] sm:$0xff]  ;;  %s189_s19 = scalar_lea.vmem [#allocation7], %s332_s5 }
  0x4e   : > { %s192_s30 = sld [smem:[#allocation2 + %s334_s21]]  ;;  %s195_s17 = sadd.s32 2, %s334_s21 }
  0x4f   : > { %s196_s3 = sld [smem:[#allocation2 + %s195_s17]]  ;;  %s199_s25 = sadd.s32 1, %s334_s21 }
  0x50   : > { %s200_s7 = sld [smem:[#allocation2 + %s199_s25]]  ;;  %s203_s16 = sadd.s32 3, %s334_s21 }
  0x51   : > { %s204_s8 = sld [smem:[#allocation2 + %s203_s16]]  ;;  %s226_s24 = sshll.u32 %s189_s19, 4  ;;  %s738_s24 = int_to_ptr.vmem [resolvable:$true] %s226_s24 }
  0x52   : > { %s743_s27 = scalar_lea.hbm %s792_s2, %s334_s21  ;;  %s210_s28 = scalar_lea.sflag [#allocation4], %s729_s18 }
  0x53   : > { %s458_s29 = scalar_lea.vmem %s738_s24, 128  ;;  %p809_p8 = scmp.ne.s32.totalorder %s805_s15, 0 }
  0x54   : > { %v193_v1 = vstv %s192_s30  ;;  %p459_p4 = scmp.ne.s32.totalorder %s738_s24, %s458_s29  ;;  %s548_s5 = smov [#allocation7]  }
  0x55   : > { %v194_v2 = vmul.f32 %v193_v1, %v190_v0  ;;  %v197_v3 = vstv %s196_s3  ;;  %s462_s4 = sshll.u32 %s548_s5, 4  ;;  %s463_s4 = int_to_ptr.vmem [resolvable:$false] %s462_s4 }
  0x56   : > { %v201_v4 = vstv %s200_s7  ;;  %p460_p2 = pnand %p459_p4, %p809_p8  ;;  %s464_s6 = scalar_lea.vmem %s463_s4, 256 }
  0x57   : > { %v198_v5 = vadd.f32 %v197_v3, %v194_v2  ;;  %v202_v6 = vmul.f32 %v201_v4, %v190_v0  ;;  %v205_v7 = vstv %s204_s8  ;;  %p465_p0 = scmp.lt.s32.totalorder %s738_s24, %s463_s4  ;;  %p466_p3 = scmp.lt.s32.totalorder %s464_s6, %s458_s29 }
  0x58   : > { %p461_p12 = pneg %p460_p2 }
  0x59   : > { %v206_v8 = vadd.f32 %v205_v7, %v202_v6  ;;  %p467_p5 = por %p466_p3, %p465_p0 }
  0x5b   : > { %v207_v9 = vmax.f32 %v198_v5, %v206_v8  ;;  %p468_p11 = pnand %p467_p5, %p461_p12 }
  0x5d   : > { %208 = vst [vmem:[%s189_s19] sm:$0xff] %v207_v9 }
  0x5e   : > { %471 = shalt.err (!%p468_p11)
}
  0x5f   : > { %s472_s18 = scalar_lea.hbm %s743_s27, 128  ;;  %s476_s17 = scalar_lea.hbm %s792_s2, 256 }
  0x60   : > { %p473_p13 = scmp.ne.s32.totalorder %s743_s27, %s472_s18  ;;  %p477_p6 = scmp.lt.u32.totalorder %s743_s27, %s792_s2 }
  0x61   : > { %p478_p9 = scmp.lt.u32.totalorder %s476_s17, %s472_s18  ;;  %p480_p4 = scmp.lt.u32.totalorder %s472_s18, %s743_s27 }
  0x62   : > { %p474_p7 = pnand %p473_p13, %p809_p8 }
  0x63   : > { %p479_p1 = por %p478_p9, %p477_p6 }
  0x64   : > { %p475_p10 = pneg %p474_p7 }
  0x65   : > { %p481_p2 = por %p480_p4, %p479_p1 }
  0x67   : > { %p482_p12 = pnand %p481_p2, %p475_p10 }
  0x69   : > { %485 = shalt.err (!%p482_p12)
}
  0x6a   : > { %348 = dma.vmem_to_hbm [thread:$0]  (%p809_p8), %s738_s24, 128, %s743_s27, %s210_s28  }
  0x6b PF: > { %s238_s7 = sand.u32 1, %s524_s9   ;;  %p810_p0 = scmp.ne.s32.totalorder %s800_s20, 0 }
  0x6c   : > { %p811_p3 = scmp.ge.s32.totalorder %s544_s14, 2  ;;  %s239_s16 = scalar_lea.sflag [#allocation4], %s238_s7 }
  0x6e   : > { %p359_p5 = pnand %p811_p3, %p810_p0 }
  0x70   : > { %519 = dma.done.wait (!%p359_p5), %s239_s16, 128  }
  0x71   : > { %521 = vsyncadd (!%p359_p5), %s239_s16, 4294967168  ;;  %s19_s14 = sadd.s32 1, %s544_s14   ;;  %s812_s9 = smov %s528_s10 }
  0x72   : > { %p16_p11 = scmp.ge.s32.totalorder %s19_s14, 4   ;;  %s813_s10 = smov %s532_s11 }
  0x73   : > { %s814_s11 = smov %s681_s26  ;;  %s815_s12 = smov %s540_s13 }
  0x74   : > { %s816_s13 = smov %s818_s22  ;;  %18 = sbr.rel (!%p16_p11) target bundleno = 7 (0x7), region = 78 }
  0x7b   :  { %244 = vsyncpa [#allocation3], 1 }
  0x7c   :  { %246 = vsyncpa [#allocation3 + $0x1], 1 }
  0x7d   :  { %247 = vsyncpa [#allocation4], 1 }
  0x7e   :  { %249 = vsyncpa [#allocation4 + $0x1], 1 }
  0x7f   :  { %250 = vsyncpa [#allocation5], 1 }
  0x80   :  { %252 = vsyncpa [#allocation5 + $0x1], 1 }

</bundles_post_ra>
